<compile_context>
chip_gen: v5e
topology: v5e:2x2
jax: 0.10.0
libtpu: 0.0.40
codegen_flags: <defaults>
</compile_context>

<pallas_src>
import functools

import jax
import jax.numpy as jnp
from jax.experimental import pallas as pl
from jax.experimental.pallas import tpu as pltpu


def _round_up(x, m):
    return ((x + m - 1) // m) * m


def _conv1d_dropout_kernel(x_ref, h_ref, w_ref, b_ref, m_ref, o_ref, *,
                           k_size, l_tile):
    # x_ref: (C_in_p, L_TILE)       main input window for this output tile
    # h_ref: (C_in_p, 128)          halo (next 128 input columns; only the first
    #                               k_size-1 of them are ever needed)
    # w_ref: (C_out, K*C_in_p)      tap-major flattened weight
    # b_ref: (C_out, 1)             bias
    # m_ref: (C_out, 1)             dropout channel mask (pre-scaled by 1/(1-p))
    # o_ref: (C_out, L_TILE)        lane-dense output tile
    if k_size == 1:
        stacked = x_ref[...]
    else:
        # One contiguous lane window (main + halo): (C_in_p, L_TILE + 128).
        x_win = jnp.concatenate([x_ref[...], h_ref[...]], axis=-1)
        # Tap-major stack along the sublane axis: row block kk holds x[:, l + kk].
        # Static lane offsets -> static shifts; sublane-aligned concat (C_in_p % 8 == 0).
        stacked = jnp.concatenate(
            [x_win[:, kk:kk + l_tile] for kk in range(k_size)], axis=0)

    # Single fused MXU matmul over the K*C_in contraction, f32 accumulate.
    acc = jnp.dot(w_ref[...], stacked, preferred_element_type=jnp.float32)

    # bias + per-(batch, channel) dropout mask, broadcast over the lane dim.
    acc = (acc + b_ref[...].astype(jnp.float32)) * m_ref[...].astype(jnp.float32)
    o_ref[...] = acc.astype(o_ref.dtype)


def conv1d_dropout(x, weight, bias, channel_mask, *, l_tile=None):
    """x: (N, C_in, L); weight: (C_out, C_in, K); bias: (C_out,);
    channel_mask: (N, C_out) already scaled by 1/(1-p) (0.0 for dropped channels).
    Returns (N, C_out, L-K+1)  (stride=1, padding=0, dilation=1, groups=1)."""
    n, c_in, l = x.shape
    c_out, c_in_w, k = weight.shape
    assert c_in == c_in_w
    l_out = l - k + 1
    assert l_out > 0, "Conv1d with padding=0 requires L >= K"

    # Sublane-align channels so the in-kernel tap stack is tile aligned
    # (no-op when C_in is already a multiple of 8).
    c_in_p = _round_up(c_in, 8)
    if c_in_p != c_in:
        x_in = jnp.pad(x, ((0, 0), (0, c_in_p - c_in), (0, 0)))
        w_in = jnp.pad(weight, ((0, 0), (0, c_in_p - c_in), (0, 0)))
    else:
        x_in, w_in = x, weight

    # Tap-major flattened weight: w_flat[o, kk*C_in_p + c] = weight[o, c, kk].
    w_flat = jnp.transpose(w_in, (0, 2, 1)).reshape(c_out, k * c_in_p)
    bias2 = bias.reshape(c_out, 1)
    mask3 = channel_mask.reshape(n, c_out, 1)

    in_itm = jnp.dtype(x.dtype).itemsize
    w_itm = jnp.dtype(weight.dtype).itemsize

    def est_vmem(lt):
        def tb(r, c, isz):
            return _round_up(max(r, 1), 8) * _round_up(max(c, 1), 128) * isz
        return (2 * tb(c_in_p, lt, in_itm)            # x main block (double buffered)
                + 2 * tb(c_in_p, 128, in_itm)         # halo block
                + 2 * tb(c_out, lt, in_itm)           # output block
                + 2 * tb(c_out, k * c_in_p, w_itm)    # weight (grid invariant)
                + 4 * tb(c_out, 1, 4)                 # bias + mask
                + tb(c_in_p, lt + 128, 4)             # x_win temporary
                + tb(k * c_in_p, lt, 4)               # stacked temporary
                + tb(c_out, lt, 4))                   # f32 matmul result

    if l_tile is None:
        # Largest lane-dense tile (multiple of 128, up to 1024) whose footprint
        # fits a conservative budget valid on v5e/v6e/v7x.
        budget = 20 * 1024 * 1024
        cands = [c for c in (1024, 512, 256, 128) if c <= _round_up(l_out, 128)]
        if not cands:
            cands = [128]
        l_tile = cands[-1]
        for c in cands:
            if est_vmem(c) <= budget:
                l_tile = c
                break
    num_l = pl.cdiv(l_out, l_tile)

    vmem_limit = int(min(max(2 * est_vmem(l_tile), 32 * 1024 * 1024),
                         48 * 1024 * 1024))

    lt_blocks = l_tile // 128          # L-tile size in units of 128-lane blocks
    last_halo_blk = (l - 1) // 128     # clamp: halo block never starts past x

    kernel = functools.partial(_conv1d_dropout_kernel, k_size=k, l_tile=l_tile)

    out = pl.pallas_call(
        kernel,
        out_shape=jax.ShapeDtypeStruct((n, c_out, l_out), x.dtype),
        grid_spec=pltpu.PrefetchScalarGridSpec(
            num_scalar_prefetch=0,
            grid=(n, num_l),
            in_specs=[
                # main (C_in_p, L_TILE) window of x for this output tile
                pl.BlockSpec((None, c_in_p, l_tile), lambda b, j: (b, 0, j)),
                # 128-lane halo (next input columns); index clamped in-bounds —
                # whenever the clamp is active, no valid output uses the halo.
                pl.BlockSpec(
                    (None, c_in_p, 128),
                    lambda b, j: (b, 0,
                                  jnp.minimum((j + 1) * lt_blocks, last_halo_blk))),
                # grid-invariant flattened weight / bias
                pl.BlockSpec((c_out, k * c_in_p), lambda b, j: (0, 0)),
                pl.BlockSpec((c_out, 1), lambda b, j: (0, 0)),
                # per-batch channel dropout mask
                pl.BlockSpec((None, c_out, 1), lambda b, j: (b, 0, 0)),
            ],
            out_specs=pl.BlockSpec((None, c_out, l_tile), lambda b, j: (b, 0, j)),
        ),
        compiler_params=pltpu.CompilerParams(
            dimension_semantics=("parallel", "parallel"),
            vmem_limit_bytes=vmem_limit,
        ),
    )(x_in, x_in, w_flat, bias2, mask3)

    return out


if __name__ == "__main__":
    # Small shapes consistent with nn.Conv1d(C_in=4, C_out=8, K=3) on (N=2, C_in=4, L=16)
    N, C_IN, C_OUT, K, L = 2, 4, 8, 3, 16
    DROPOUT_RATE = 0.5

    key = jax.random.PRNGKey(0)
    kx, kw, kb, km = jax.random.split(key, 4)

    x = jax.random.normal(kx, (N, C_IN, L), dtype=jnp.float32)
    weight = jax.random.normal(kw, (C_OUT, C_IN, K), dtype=jnp.float32) * 0.1
    bias = jax.random.normal(kb, (C_OUT,), dtype=jnp.float32) * 0.1

    # Dropout1d training-mode channel mask: per (batch, channel), scaled by 1/(1-p).
    keep = jax.random.bernoulli(km, 1.0 - DROPOUT_RATE, (N, C_OUT))
    channel_mask = keep.astype(jnp.float32) / (1.0 - DROPOUT_RATE)

    out = conv1d_dropout(x, weight, bias, channel_mask)
    out = jax.block_until_ready(out)

    # Pure-JAX reference (same math: conv1d + bias + channel dropout mask)
    ref_conv = jax.lax.conv_general_dilated(
        x, weight, window_strides=(1,), padding="VALID",
        dimension_numbers=("NCH", "OIH", "NCH"),
    ) + bias.reshape(1, C_OUT, 1)
    ref = ref_conv * channel_mask.reshape(N, C_OUT, 1)

    assert out.shape == (N, C_OUT, L - K + 1)
    assert jnp.allclose(out, ref, atol=1e-4, rtol=1e-4)
    print("KERNEL_OK")
</pallas_src>

<mosaic_0001>
module attributes {stable_mosaic.version = 11 : i64} {
  func.func @_conv1d_dropout_kernel(%arg0: i32, %arg1: i32, %arg2: memref<1x8x128xf32, #tpu.memory_space<vmem>>, %arg3: memref<1x8x128xf32, #tpu.memory_space<vmem>>, %arg4: memref<8x24xf32, #tpu.memory_space<vmem>>, %arg5: memref<8x1xf32, #tpu.memory_space<vmem>>, %arg6: memref<1x8x1xf32, #tpu.memory_space<vmem>>, %arg7: memref<1x8x128xf32, #tpu.memory_space<vmem>>) attributes {dimension_semantics = [#tpu.dimension_semantics<parallel>, #tpu.dimension_semantics<parallel>], iteration_bounds = array<i64: 2, 1>, scalar_prefetch = 0 : i64, scratch_operands = 0 : i64, tpu.core_type = #tpu.core_type<tc>, window_params = [{transform_indices = @transform_0, window_bounds = array<i64: 1, 8, 128>}, {transform_indices = @transform_1, window_bounds = array<i64: 1, 8, 128>}, {pipeline_mode = #tpu.pipeline_mode<synchronous>, transform_indices = @transform_2, window_bounds = array<i64: 8, 24>}, {pipeline_mode = #tpu.pipeline_mode<synchronous>, transform_indices = @transform_3, window_bounds = array<i64: 8, 1>}, {transform_indices = @transform_4, window_bounds = array<i64: 1, 8, 1>}, {transform_indices = @transform_5, window_bounds = array<i64: 1, 8, 128>}]} {
    %c0 = arith.constant 0 : index
    %c0_0 = arith.constant 0 : index
    %c0_1 = arith.constant 0 : index
    %0 = vector.load %arg2[%c0, %c0_0, %c0_1] : memref<1x8x128xf32, #tpu.memory_space<vmem>>, vector<1x8x128xf32>
    %1 = vector.shape_cast %0 : vector<1x8x128xf32> to vector<8x128xf32>
    %c0_2 = arith.constant 0 : index
    %c0_3 = arith.constant 0 : index
    %c0_4 = arith.constant 0 : index
    %2 = vector.load %arg3[%c0_2, %c0_3, %c0_4] : memref<1x8x128xf32, #tpu.memory_space<vmem>>, vector<1x8x128xf32>
    %3 = vector.shape_cast %2 : vector<1x8x128xf32> to vector<8x128xf32>
    %4 = tpu.concatenate %1, %3 in 1 : vector<8x128xf32>, vector<8x128xf32> -> vector<8x256xf32>
    %5 = vector.extract_strided_slice %4 {offsets = [0, 0], sizes = [8, 128], strides = [1, 1]} : vector<8x256xf32> to vector<8x128xf32>
    %6 = vector.extract_strided_slice %4 {offsets = [0, 1], sizes = [8, 128], strides = [1, 1]} : vector<8x256xf32> to vector<8x128xf32>
    %7 = vector.extract_strided_slice %4 {offsets = [0, 2], sizes = [8, 128], strides = [1, 1]} : vector<8x256xf32> to vector<8x128xf32>
    %8 = tpu.concatenate %5, %6, %7 in 0 : vector<8x128xf32>, vector<8x128xf32>, vector<8x128xf32> -> vector<24x128xf32>
    %c0_5 = arith.constant 0 : index
    %c0_6 = arith.constant 0 : index
    %9 = vector.load %arg4[%c0_5, %c0_6] : memref<8x24xf32, #tpu.memory_space<vmem>>, vector<8x24xf32>
    %cst = arith.constant dense<0.000000e+00> : vector<8x128xf32>
    %10 = tpu.matmul %9, %8, %cst {dimension_numbers = #tpu.dot_dimension_numbers<[1], [0], [0], [1], [0, 0, 1, 1], [], []>} : vector<8x24xf32>, vector<24x128xf32>, vector<8x128xf32> -> vector<8x128xf32>
    %c0_7 = arith.constant 0 : index
    %c0_8 = arith.constant 0 : index
    %11 = vector.load %arg5[%c0_7, %c0_8] : memref<8x1xf32, #tpu.memory_space<vmem>>, vector<8x1xf32>
    %12 = vector.broadcast %11 : vector<8x1xf32> to vector<8x128xf32>
    %13 = arith.addf %10, %12 : vector<8x128xf32>
    %c0_9 = arith.constant 0 : index
    %c0_10 = arith.constant 0 : index
    %c0_11 = arith.constant 0 : index
    %14 = vector.load %arg6[%c0_9, %c0_10, %c0_11] : memref<1x8x1xf32, #tpu.memory_space<vmem>>, vector<1x8x1xf32>
    %15 = vector.shape_cast %14 : vector<1x8x1xf32> to vector<8x1xf32>
    %16 = vector.broadcast %15 : vector<8x1xf32> to vector<8x128xf32>
    %17 = arith.mulf %13, %16 : vector<8x128xf32>
    %c0_12 = arith.constant 0 : index
    %c0_13 = arith.constant 0 : index
    %c0_14 = arith.constant 0 : index
    %18 = vector.load %arg7[%c0_12, %c0_13, %c0_14] : memref<1x8x128xf32, #tpu.memory_space<vmem>>, vector<1x8x128xf32>
    %19 = vector.shape_cast %18 : vector<1x8x128xf32> to vector<8x128xf32>
    %20 = vector.shape_cast %17 : vector<8x128xf32> to vector<1x8x128xf32>
    tpu.vector_store %arg7[%c0_12, %c0_13, %c0_14], %20 {strides = array<i32>} : memref<1x8x128xf32, #tpu.memory_space<vmem>>, vector<1x8x128xf32>,
    return
  }
  func.func @transform_0(%arg0: i32, %arg1: i32) -> (i32, i32, i32) {
    %c0_i32 = arith.constant 0 : i32
    %c0_i32_0 = arith.constant 0 : i32
    return %arg0, %c0_i32, %arg1 : i32, i32, i32
  }
  func.func @transform_1(%arg0: i32, %arg1: i32) -> (i32, i32, i32) {
    %c1_i32 = arith.constant 1 : i32
    %0 = arith.addi %arg1, %c1_i32 : i32
    %c1_i32_0 = arith.constant 1 : i32
    %1 = arith.muli %0, %c1_i32_0 : i32
    %c0_i32 = arith.constant 0 : i32
    %2 = arith.minsi %1, %c0_i32 : i32
    %c0_i32_1 = arith.constant 0 : i32
    %c0_i32_2 = arith.constant 0 : i32
    return %arg0, %c0_i32_1, %2 : i32, i32, i32
  }
  func.func @transform_2(%arg0: i32, %arg1: i32) -> (i32, i32) {
    %c0_i32 = arith.constant 0 : i32
    %c0_i32_0 = arith.constant 0 : i32
    %c0_i32_1 = arith.constant 0 : i32
    return %c0_i32, %c0_i32_0 : i32, i32
  }
  func.func @transform_3(%arg0: i32, %arg1: i32) -> (i32, i32) {
    %c0_i32 = arith.constant 0 : i32
    %c0_i32_0 = arith.constant 0 : i32
    %c0_i32_1 = arith.constant 0 : i32
    return %c0_i32, %c0_i32_0 : i32, i32
  }
  func.func @transform_4(%arg0: i32, %arg1: i32) -> (i32, i32, i32) {
    %c0_i32 = arith.constant 0 : i32
    %c0_i32_0 = arith.constant 0 : i32
    %c0_i32_1 = arith.constant 0 : i32
    return %arg0, %c0_i32, %c0_i32_0 : i32, i32, i32
  }
  func.func @transform_5(%arg0: i32, %arg1: i32) -> (i32, i32, i32) {
    %c0_i32 = arith.constant 0 : i32
    %c0_i32_0 = arith.constant 0 : i32
    return %arg0, %c0_i32, %arg1 : i32, i32, i32
  }
}

</mosaic_0001>

<bundles_post_ra>
// kernel: tpu_custom_call.1
= control target key start
LH: loop header
LB: loop body
LE: loop exit
PB: predicated region body
PF: predicated region fallthrough
CT: control target
= control target key end

     0   :  { %10 = vsyncpa [#allocation3], 0  ;;  %s875_s0 = inlined_call_operand.vmem [shape: f32[2,8,16], index: 0, kind: input, shape index: {}]   ;;  %s876_s1 = inlined_call_operand.hbm [shape: f32[2,8,16], index: 1, kind: input, shape index: {}]   ;;  %s877_s2 = inlined_call_operand.vmem [shape: f32[8,24], index: 2, kind: input, shape index: {}]   ;;  %s878_s3 = inlined_call_operand.vmem [shape: f32[8,1], index: 3, kind: input, shape index: {}]   ;;  %s879_s4 = inlined_call_operand.vmem [shape: f32[2,8,1], index: 4, kind: input, shape index: {}]   ;;  %s880_s5 = inlined_call_operand.hbm [shape: f32[2,8,14], index: 5, kind: output, shape index: {}]  }
   0x1   :  { %12 = vsyncpa [#allocation3 + $0x1], 0 }
   0x2   :  { %13 = vsyncpa [#allocation4], 0 }
   0x3   :  { %15 = vsyncpa [#allocation4 + $0x1], 0  ;;  %s737_s18 = smov 0   ;;  %s739_s19 = smov 0  }
   0x4   :  { %s741_s20 = smov 0   ;;  %s743_s21 = smov 0  }
   0x5   :  { %s745_s22 = smov 0   ;;  %s747_s23 = smov 0  }
   0x6 LB: > { %s497_s24 = sadd.s32 4294967295, %s702_s23   ;;  %s498_s25 = sadd.s32 4294967294, %s702_s23   ;;  %s702_s23 = sphi %s747_s23, %s21_s23   ;;  %s698_s22 = sphi %s745_s22, %s889_s22   ;;  %s694_s21 = sphi %s743_s21, %s888_s21   ;;  %s690_s20 = sphi %s741_s20, %s887_s20   ;;  %s686_s19 = sphi %s739_s19, %s886_s19   ;;  %s682_s18 = sphi %s737_s18, %s885_s18  }
   0x7   : > { %s33_s26 = sadd.s32 1, %s698_s22  ;;  %s76_s27 = sadd.s32 1, %s690_s20 }
   0x8   : > { %p35_p0 = scmp.ge.s32.totalorder %s33_s26, 2  ;;  %p83_p1 = scmp.ne.s32.totalorder %s690_s20, %s686_s19 }
   0x9   : > { %p84_p2 = scmp.eq.s32.totalorder %s702_s23, 0  ;;  %p89_p3 = scmp.ne.s32.totalorder %s686_s19, %s682_s18 }
   0xa   : > { %s891_s26 = smov (%p35_p0, %s33_s26), 0  ;;  %p90_p5 = scmp.eq.s32.totalorder %s497_s24, 0 }
   0xb   : > { %p778_p4 = por %p84_p2, %p83_p1  ;;  %s71_s29 = ssub.s32 %s698_s22, %s891_s26 }
   0xc   : > { %p183_p6 = scmp.eq.s32.totalorder %s497_s24, 1  ;;  %p74_p7 = scmp.eq.s32.totalorder %s71_s29, 0 }
   0xd   : > { %p784_p8 = por %p90_p5, %p89_p3  ;;  %p189_p10 = scmp.eq.s32.totalorder %s498_s25, 1 }
   0xe   : > { %p788_p9 = por %p183_p6, %p83_p1  ;;  %p500_p12 = scmp.ge.s32.totalorder %s702_s23, 2 }
   0xf   : > { %s793_s7 = scalar_select %p74_p7, %s690_s20, %s76_s27  }
  0x10   : > { %p795_p11 = por %p189_p10, %p89_p3  ;;  %p525_p13 = scmp.lt.s32.totalorder %s702_s23, 2 }
  0x11   : > { %s225_s9 = sand.u32 1, %s690_s20   ;;  %s502_s11 = sshll.u32 %s698_s22, 3 }
  0x12   : > { %s501_s10 = sshll.u32 %s225_s9, 3  ;;  %s237_s14 = scalar_lea.hbm %s876_s1, %s502_s11 }
  0x13   : > { %s229_s15 = scalar_lea.vmem [#allocation2], %s501_s10  ;;  %s239_s17 = sshll.u32 %s237_s14, 4  ;;  %s240_s17 = int_to_ptr.hbm [resolvable:$true] %s239_s17 }
  0x14   : > { %s241_s16 = sshll.u32 %s229_s15, 4  ;;  %p518_p0 = pnand %p525_p13, %p778_p4  ;;  %s242_s16 = int_to_ptr.vmem [resolvable:$true] %s241_s16 }
  0x15   : > { %p503_p1 = scmp.ge.s32.totalorder %s702_s23, 1  ;;  %p253_p2 = scmp.lt.s32.totalorder %s702_s23, 3 }
  0x16   : > { %s226_s24 = scalar_lea.sflag [#allocation3], %s225_s9 }
  0x17   : > { %520 = dma.hbm_to_vmem [thread:$0]  (!%p518_p0), %s240_s17, 128, %s242_s16, %s226_s24  }
  0x18   : > { %p254_p3 = pnand %p503_p1, %p253_p2 }
  0x19   : > { %s811_s25 = sand.u32 (!%p254_p3), 1, %s686_s19  }
  0x1a   : > { %257 = sbr.rel (%p254_p3) target bundleno = 303 (0x12f), region = 40  ;;  %s504_s27 = sshll.u32 (!%p254_p3), %s811_s25, 3 }
  0x1b   : > { %s260_s29 = scalar_lea.sflag (!%p254_p3), [#allocation3], %s811_s25  ;;  %s263_s10 = scalar_lea.vmem (!%p254_p3), [#allocation2], %s504_s27 }
  0x1f   : > { %673 = dma.done.wait (%p784_p8), %s260_s29, 128  }
  0x20   : > { %675 = vsyncadd (%p784_p8), %s260_s29, 4294967168  ;;  %p302_p4 = scmp.lt.s32.totalorder %s694_s21, 1  ;;  %v317_v1 = vld [vmem:[%s263_s10] sm:$0xff]  ;;  %s704_s14 = smov 126   ;;  %v706_v4 = vmov 0   ;;  %vm331_vm0 = vcmask 1031168  }
  0x21   : > { %s705_s15 = smov 127   ;;  %v335_v3 = vld [vmem:[%s878_s3] sm:$0xff]  ;;  %588 = vset.pattern.permute.xlu1 %v706_v4  ;;  %589 = vset.pattern.permute.xlu0 %v706_v4  ;;  %vm324_vm1 = vcmask 1039360   ;;  %vm341_vm2 = vcmask 195584   ;;  %s374_s17 = scalar_lea.sflag [#allocation4], %s811_s25 }
  0x22   : > { %s303_s28 = scalar_select %p302_p4, %s694_s21, 1  ;;  %338 = vperm.xlu1 %588, %v335_v3   ;;  %v334_v14 = vld [vmem:[%s877_s2] sm:$0xff] }
  0x24   : > { %s506_s9 = sshll.u32 %s303_s28, 3 }
  0x25   : > { %s308_s13 = scalar_lea.vmem %s875_s0, %s506_s9  ;;  %s315_s29 = scalar_lea.vmem %s879_s4, %s506_s9 }
  0x26   : > { %v316_v0 = vld [vmem:[%s308_s13] sm:$0xff]  ;;  %s510_s9 = sshll.u32 %s694_s21, 3 }
  0x27   : > { %v578_v2 = vpack.i.bf16 %v317_v1, %v316_v0  ;;  %v365_v5 = vld [vmem:[%s315_s29] sm:$0xff]  ;;  %s385_s13 = scalar_lea.hbm %s880_s5, %s510_s9 }
  0x28   : > { %s389_s16 = sshll.u32 %s385_s13, 4  ;;  %s390_s16 = int_to_ptr.hbm [resolvable:$true] %s389_s16 }
  0x29   : > { %579 = vrot.lane.b32.xlu0 %v578_v2, %s704_s14  ;;  %s301_s14 = scalar_lea.vmem [#allocation5], %s504_s27  ;;  %s634_s30 = sshra.s32 %s390_s16, 4  ;;  %s635_s30 = int_to_ptr.hbm [resolvable:$true] %s634_s30 }
  0x2a   : > { %368 = vperm.xlu1 %588, %v365_v5   ;;  %s636_s21 = scalar_lea.hbm %s635_s30, 8  ;;  %s640_s27 = scalar_lea.hbm %s880_s5, 16 }
  0x2b   : > { %p637_p5 = scmp.ne.s32.totalorder %s635_s30, %s636_s21  ;;  %p641_p8 = scmp.lt.s32.totalorder %s635_s30, %s880_s5 }
  0x2c   : > { %p642_p10 = scmp.lt.s32.totalorder %s640_s27, %s636_s21 }
  0x2d   : > { %p638_p6 = pnand %p637_p5, %p788_p9 }
  0x2e   : > { %p643_p13 = por %p642_p10, %p641_p8 }
  0x2f   : > { %p639_p7 = pneg %p638_p6 }
  0x31   : > { %584 = vrot.lane.b32.xlu0 %v578_v2, %s705_s15  ;;  %s387_s15 = sshll.u32 %s301_s14, 4  ;;  %p644_p0 = pnand %p643_p13, %p639_p7  ;;  %s388_s15 = int_to_ptr.vmem [resolvable:$true] %s387_s15 }
  0x94   : > { %v339_v15 = vpop.permute.xlu1 %338 }
  0x9b   : > { %v580_v6 = vpop.permute.xlu0 %579 }
  0x9c   : > { %v582_v7 = vunpack.i.h.bf16 %v580_v6  ;;  %v581_v8 = vunpack.i.l.bf16 %v580_v6  ;;  %v369_v18 = vpop.permute.xlu1 %368 }
  0x9e   : > { %v332_v9 = vsel %vm331_vm0, %v581_v8, %v582_v7 }
  0x9f   : > { %358 = vmatpush.msra.mxu0 %v332_v9 }
  0xa3   : > { %v585_v10 = vpop.permute.xlu0 %584 }
  0xa4   : > { %v587_v11 = vunpack.i.h.bf16 %v585_v10  ;;  %v586_v12 = vunpack.i.l.bf16 %v585_v10 }
  0xa6   : > { %v325_v13 = vsel %vm324_vm1, %v586_v12, %v587_v11 }
  0xa7   : > { %359 = vmatpush.msra.mxu0 %v325_v13 }
  0xa9   : > { %360 = vmatpush.msra.mxu0 %v316_v0 }
  0xaa   : > { %508 = vmatmul.msk.f32.vlgmr.msra.gmra.mxu0 %vm341_vm2, %v334_v14 }
 0x127   : > { %v362_v16 = vpop.f32.mrf.mxu0 }
 0x128   : > { %v363_v17 = vadd.f32 %v362_v16, %v339_v15 }
 0x12a   : > { %v371_v19 = vmul.f32 %v369_v18, %v363_v17 }
 0x12c   : > { %372 = vst [vmem:[%s301_s14] sm:$0xff] %v371_v19 }
 0x12d   : > { %647 = shalt.err (!%p644_p0)
}
 0x12e   : > { %515 = dma.vmem_to_hbm [thread:$0]  (%p788_p9), %s388_s15, 128, %s390_s16, %s374_s17  }
 0x12f PF: > { %s401_s25 = sand.u32 1, %s682_s18   ;;  %p522_p1 = pnand %p500_p12, %p795_p11 }
 0x130   : > { %s402_s9 = scalar_lea.sflag [#allocation4], %s401_s25 }
 0x131   : > { %p523_p2 = pneg %p522_p1 }
 0x133   : > { %677 = dma.done.wait (%p523_p2), %s402_s9, 128  }
 0x134   : > { %679 = vsyncadd (%p523_p2), %s402_s9, 4294967168  ;;  %s21_s23 = sadd.s32 1, %s702_s23   ;;  %s885_s18 = smov %s686_s19 }
 0x135   : > { %p18_p3 = scmp.ge.s32.totalorder %s21_s23, 4   ;;  %s886_s19 = smov %s690_s20 }
 0x136   : > { %s887_s20 = smov %s793_s7  ;;  %s888_s21 = smov %s698_s22 }
 0x137   : > { %s889_s22 = smov %s891_s26  ;;  %20 = sbr.rel (!%p18_p3) target bundleno = 6 (0x6), region = 91 }
 0x13c   :  { %408 = vsyncpa [#allocation3], 1 }
 0x13d   :  { %410 = vsyncpa [#allocation3 + $0x1], 1 }
 0x13e   :  { %411 = vsyncpa [#allocation4], 1 }
 0x13f   :  { %413 = vsyncpa [#allocation4 + $0x1], 1 }

</bundles_post_ra>
